<compile_context>
chip_gen: v5e
topology: v5e:2x2
jax: 0.10.0
libtpu: 0.0.40
codegen_flags: <defaults>
</compile_context>

<pallas_src>
import functools

import jax
import jax.numpy as jnp
from jax.experimental import pallas as pl
from jax.experimental.pallas import tpu as pltpu


def _act_quant_kernel(x_ref, o_ref, *, a_bit: int):
    # Compute in f32 regardless of input dtype (bf16 mantissa can flip
    # rounding decisions near .5 boundaries when n is large).
    x = x_ref[...].astype(jnp.float32)
    if a_bit == 1:
        # sign(clamp(x, 0, 1)) == 1 for x > 0 else 0 — single compare+select.
        q = jnp.where(x > 0.0, 1.0, 0.0)
    else:
        n = float(2 ** a_bit - 1)
        xc = jnp.clip(x, 0.0, 1.0)
        q = jnp.round(xc * n) * (1.0 / n)
    o_ref[...] = q.astype(o_ref.dtype)


def activation_quantize(x: jax.Array, a_bit: int, *,
                        target_block_elems: int = 512 * 1024) -> jax.Array:
    """DoReFa activation quantization. x: any-shape float array (e.g. NCHW)."""
    assert a_bit <= 8 or a_bit == 32

    # Identity path: no reshape / pallas_call, zero extra HBM traffic.
    if a_bit == 32:
        return x

    orig_shape = x.shape
    orig_dtype = x.dtype

    SUBLANES = 8
    flat = x.reshape(-1)
    total = flat.shape[0]

    # Pick the widest lane dimension that divides the element count so the
    # output is lane-dense (wide unmasked vst) and no padding copy is needed.
    lanes = None
    for w in (2048, 1024, 512, 256, 128):
        if total % (SUBLANES * w) == 0:
            lanes = w
            break

    needs_pad = lanes is None
    if needs_pad:
        # Rare for NCHW activations: pad the tail up to a multiple of 8*128.
        lanes = 128
        unit = SUBLANES * lanes
        padded = ((total + unit - 1) // unit) * unit
        flat = jnp.pad(flat, (0, padded - total))
    else:
        padded = total

    rows = padded // lanes                      # multiple of 8 by construction
    tile_rows = (target_block_elems // lanes) // SUBLANES * SUBLANES
    tile_rows = max(SUBLANES, min(rows, tile_rows))   # still a multiple of 8
    x2d = flat.reshape(rows, lanes)
    n_tiles = pl.cdiv(rows, tile_rows)          # partial last block is masked

    kernel = functools.partial(_act_quant_kernel, a_bit=a_bit)

    out2d = pl.pallas_call(
        kernel,
        out_shape=jax.ShapeDtypeStruct((rows, lanes), orig_dtype),
        grid_spec=pltpu.PrefetchScalarGridSpec(
            num_scalar_prefetch=0,
            grid=(n_tiles,),
            in_specs=[pl.BlockSpec((tile_rows, lanes), lambda i: (i, 0))],
            out_specs=pl.BlockSpec((tile_rows, lanes), lambda i: (i, 0)),
        ),
        compiler_params=pltpu.CompilerParams(
            # 1-D parallel grid: shards across both TensorCores on v7x,
            # harmless on single-TC v5e/v6e.
            dimension_semantics=("parallel",),
            # 2 MiB f32 blocks, double-buffered in + out => ~8 MiB scoped VMEM:
            # safe on v5e/v6e (128 MiB) and v7x (64 MiB).
            vmem_limit_bytes=32 * 1024 * 1024,
        ),
    )(x2d)

    if needs_pad:
        return out2d.reshape(-1)[:total].reshape(orig_shape)
    return out2d.reshape(orig_shape)


def _reference(x, a_bit):
    if a_bit == 32:
        return x
    xc = jnp.clip(x.astype(jnp.float32), 0.0, 1.0)
    if a_bit == 1:
        return jnp.sign(xc).astype(x.dtype)
    n = float(2 ** a_bit - 1)
    return (jnp.round(xc * n) / n).astype(x.dtype)


if __name__ == "__main__":
    key = jax.random.PRNGKey(0)
    k0, k1, k2 = jax.random.split(key, 3)

    # Small NCHW activation tensor; values span [-1.5, 1.5] so clamping matters.
    x = jax.random.uniform(k0, (2, 4, 16, 16), dtype=jnp.float32,
                           minval=-1.5, maxval=1.5)
    # Odd-sized tensor to exercise the (rare) tail-padding path.
    x_odd = jax.random.uniform(k1, (3, 5, 7, 9), dtype=jnp.float32,
                               minval=-1.5, maxval=1.5)
    # bf16 input exercises the f32-compute / cast-back path and wide lanes.
    x_bf16 = jax.random.uniform(k2, (2, 8, 16, 16), dtype=jnp.float32,
                                minval=-1.5, maxval=1.5).astype(jnp.bfloat16)

    ok = True
    for inp in (x, x_odd, x_bf16):
        for a_bit in (4, 1, 8, 32):
            y = activation_quantize(inp, a_bit)
            y = jax.block_until_ready(y)
            y_ref = _reference(inp, a_bit)
            if y.shape != inp.shape or y.dtype != inp.dtype:
                ok = False
            if not jnp.allclose(y.astype(jnp.float32),
                                y_ref.astype(jnp.float32),
                                atol=1e-6, rtol=1e-6):
                ok = False

    if ok:
        print("KERNEL_OK")
    else:
        print("KERNEL_MISMATCH")
</pallas_src>

<mosaic_0001>
module attributes {stable_mosaic.version = 11 : i64} {
  func.func @_act_quant_kernel(%arg0: i32, %arg1: memref<8x256xf32, #tpu.memory_space<vmem>>, %arg2: memref<8x256xf32, #tpu.memory_space<vmem>>) attributes {dimension_semantics = [#tpu.dimension_semantics<parallel>], iteration_bounds = array<i64: 1>, scalar_prefetch = 0 : i64, scratch_operands = 0 : i64, tpu.core_type = #tpu.core_type<tc>, window_params = [{transform_indices = @transform_0, window_bounds = array<i64: 8, 256>}, {transform_indices = @transform_1, window_bounds = array<i64: 8, 256>}]} {
    %c0 = arith.constant 0 : index
    %c0_0 = arith.constant 0 : index
    %0 = vector.load %arg1[%c0, %c0_0] : memref<8x256xf32, #tpu.memory_space<vmem>>, vector<8x256xf32>
    %cst = arith.constant 0.000000e+00 : f32
    %cst_1 = arith.constant 1.000000e+00 : f32
    %1 = vector.broadcast %cst : f32 to vector<8x256xf32>
    %2 = arith.maximumf %1, %0 : vector<8x256xf32>
    %3 = vector.broadcast %cst_1 : f32 to vector<8x256xf32>
    %4 = arith.minimumf %3, %2 : vector<8x256xf32>
    %cst_2 = arith.constant 1.500000e+01 : f32
    %5 = vector.broadcast %cst_2 : f32 to vector<8x256xf32>
    %6 = arith.mulf %4, %5 : vector<8x256xf32>
    %7 = math.roundeven %6 : vector<8x256xf32>
    %cst_3 = arith.constant 0.0666666701 : f32
    %8 = vector.broadcast %cst_3 : f32 to vector<8x256xf32>
    %9 = arith.mulf %7, %8 : vector<8x256xf32>
    %c0_4 = arith.constant 0 : index
    %c0_5 = arith.constant 0 : index
    %10 = vector.load %arg2[%c0_4, %c0_5] : memref<8x256xf32, #tpu.memory_space<vmem>>, vector<8x256xf32>
    tpu.vector_store %arg2[%c0_4, %c0_5], %9 {strides = array<i32>} : memref<8x256xf32, #tpu.memory_space<vmem>>, vector<8x256xf32>,
    return
  }
  func.func @transform_0(%arg0: i32) -> (i32, i32) {
    %c0_i32 = arith.constant 0 : i32
    %c0_i32_0 = arith.constant 0 : i32
    return %arg0, %c0_i32 : i32, i32
  }
  func.func @transform_1(%arg0: i32) -> (i32, i32) {
    %c0_i32 = arith.constant 0 : i32
    %c0_i32_0 = arith.constant 0 : i32
    return %arg0, %c0_i32 : i32, i32
  }
}

</mosaic_0001>

<bundles_post_ra>
// kernel: tpu_custom_call.1
= control target key start
LH: loop header
LB: loop body
LE: loop exit
PB: predicated region body
PF: predicated region fallthrough
CT: control target
= control target key end

     0   :  { %6 = vsyncpa [#allocation3], 0  ;;  %s142_s0 = inlined_call_operand.hbm [shape: f32[8,256], index: 0, kind: input, shape index: {}]   ;;  %s143_s1 = inlined_call_operand.hbm [shape: f32[8,256], index: 1, kind: output, shape index: {}]  }
   0x1   :  { %7 = vsyncpa [#allocation4], 0  ;;  %s13_s8 = sshll.u32 %s142_s0, 4  ;;  %s124_s9 = smov [#allocation2]   ;;  %s14_s8 = int_to_ptr.hbm [resolvable:$true] %s13_s8 }
   0x2   :  { %s15_s10 = sshll.u32 %s124_s9, 4  ;;  %s16_s10 = int_to_ptr.vmem [resolvable:$true] %s15_s10 }
   0x3   :  { %18 = dma.hbm_to_vmem [thread:$0]  %s14_s8, 256, %s16_s10, [#allocation3]  }
   0x4   :  { %120 = dma.done.wait [#allocation3], 256  }
   0x5   :  { %121 = vsyncadd [#allocation3], 4294967040  ;;  %v23_v0 = vld [vmem:[#allocation2] sm:$0xff]  ;;  %v24_v1 = vld [vmem:[#allocation2 + $0x8] sm:$0xff]  ;;  %s125_s0 = smov [#allocation5]   ;;  %s44_s14 = sshll.u32 %s143_s1, 4  ;;  %s45_s14 = int_to_ptr.hbm [resolvable:$true] %s44_s14 }
   0x6   :  { %v25_v2 = vmax.f32 %v23_v0, 0.0  ;;  %v26_v3 = vmax.f32 %v24_v1, 0.0  ;;  %s42_s11 = sshll.u32 %s125_s0, 4  ;;  %s43_s11 = int_to_ptr.vmem [resolvable:$true] %s42_s11 }
   0x8   :  { %v27_v4 = vmin.f32 %v25_v2, 1.0  ;;  %v28_v5 = vmin.f32 %v26_v3, 1.0 }
   0xa   :  { %v29_v6 = vmul.f32 15.0, %v27_v4  ;;  %v30_v7 = vmul.f32 15.0, %v28_v5 }
   0xc   :  { %v56_v8 = vcvt.f32.s32 %v29_v6  ;;  %v54_v9 = vand.u32 2147483647, %v29_v6  ;;  %v64_v10 = vcvt.f32.s32 %v30_v7  ;;  %v59_v12 = vand.u32 2147483648, %v29_v6 }
   0xd   :  { %v62_v13 = vand.u32 2147483647, %v30_v7  ;;  %v67_v15 = vand.u32 2147483648, %v30_v7 }
   0xe   :  { %v57_v11 = vcvt.s32.f32 %v56_v8  ;;  %v65_v14 = vcvt.s32.f32 %v64_v10  ;;  %vm55_vm0 = vcmp.lt.f32.partialorder %v54_v9, 8388608.0 }
   0xf   :  { %vm63_vm1 = vcmp.lt.f32.partialorder %v62_v13, 8388608.0 }
  0x10   :  { %v58_v16 = vand.u32 2147483647, %v57_v11  ;;  %v66_v17 = vand.u32 2147483647, %v65_v14 }
  0x12   :  { %v60_v18 = vor.u32 %v59_v12, %v58_v16  ;;  %v68_v19 = vor.u32 %v67_v15, %v66_v17 }
  0x14   :  { %v61_v20 = vsel %vm55_vm0, %v60_v18, %v29_v6  ;;  %v69_v22 = vsel %vm63_vm1, %v68_v19, %v30_v7 }
  0x15   :  { %v33_v21 = vmul.f32 0.06666667, %v61_v20  ;;  %v34_v23 = vmul.f32 0.06666667, %v69_v22 }
  0x17   :  { %35 = vst [vmem:[#allocation5] sm:$0xff] %v33_v21 }
  0x18   :  { %36 = vst [vmem:[#allocation5 + $0x8] sm:$0xff] %v34_v23 }
  0x19   :  { %47 = dma.vmem_to_hbm [thread:$0]  %s43_s11, 256, %s45_s14, [#allocation4]  }
  0x1a   :  { %122 = dma.done.wait [#allocation4], 256  }
  0x1b   :  { %123 = vsyncadd [#allocation4], 4294967040 }
  0x1c   :  { %52 = vsyncpa [#allocation3], 1 }
  0x1d   :  { %53 = vsyncpa [#allocation4], 1 }

</bundles_post_ra>
